<compile_context>
chip_gen: v6e
topology: v6e:2x2x1
jax: 0.10.0
libtpu: 0.0.40
codegen_flags: <defaults>
</compile_context>

<pallas_src>
import numpy as np
import jax
import jax.numpy as jnp
from jax.experimental import pallas as pl
from jax.experimental.pallas import tpu as pltpu


def _largest_divisor_leq(n, cap):
    for d in range(min(n, cap), 0, -1):
        if n % d == 0:
            return d
    return 1


def _pick_hw_tile(HW, C, N, Bt, itemsize=4, budget_bytes=8 << 20):
    """Largest HW tile (multiple of 128, divisor of HW) within a VMEM budget."""
    per_hw = Bt * (C * itemsize + N * 4)          # image block + f32 output block
    cap = max(128, budget_bytes // max(per_hw, 1))
    if HW <= cap:
        return HW
    t = (cap // 128) * 128
    while t >= 128:
        if HW % t == 0:
            return t
        t -= 128
    return HW                                      # no nice divisor: single tile


def _exemplar_match_kernel(img_ref, ex_ref, wi_ref, bi_ref, we_ref, be_ref,
                           out_ref):
    # img_ref: (Bt, C, THW)  NCHW-native, lane axis = HW (lane dense)
    # ex_ref : (Bt, N, C)
    # wi_ref : (C, C)  folded (conv1x1 + eval BN) weight, [out, in]
    # bi_ref : (C, 1)  folded bias
    # we_ref : (C, C)  exemplar Linear weight^T with 1/temperature folded in
    # be_ref : (1, C)  exemplar Linear bias   with 1/temperature folded in
    # out_ref: (Bt, N, THW)
    bt, n, c = ex_ref.shape
    cdt = img_ref.dtype

    wi = wi_ref[...]                               # hoisted: reused every batch
    bi = bi_ref[...]

    # Exemplar enhance (Linear + ReLU) for all Bt batches at once (MXU M = Bt*N).
    e = ex_ref[...].reshape(bt * n, c)
    e_enh = jnp.maximum(
        jnp.dot(e, we_ref[...], preferred_element_type=jnp.float32) + be_ref[...],
        0.0).astype(cdt).reshape(bt, n, c)

    for b in range(bt):                            # static unroll, bt <= 8
        x = img_ref[b]                             # [C, THW]
        # image enhance: folded conv+BN then ReLU, stays in [C, HW] layout
        x_enh = jnp.maximum(
            jnp.dot(wi, x, preferred_element_type=jnp.float32) + bi,
            0.0).astype(cdt)                       # [C, THW]

        # similarity: native [N,C] @ [C,THW] — no transpose needed
        sim = jnp.dot(e_enh[b], x_enh,
                      preferred_element_type=jnp.float32)        # [N, THW]

        # softmax over the exemplar axis (axis 0 here) in f32
        m = jnp.max(sim, axis=0, keepdims=True)
        p = jnp.exp(sim - m)
        denom = jnp.sum(p, axis=0, keepdims=True)
        # exact reciprocal keeps bit-closeness to the reference; use
        # approx=True for the EUP fast path when accuracy budget allows.
        out_ref[b] = (p * pl.reciprocal(denom, approx=False)).astype(out_ref.dtype)


def exemplar_image_matching(image_features, exemplar_features, params,
                            temperature=0.1, compute_dtype=jnp.float32):
    """image_features: [B, C, H, W], exemplar_features: [B, N, C] -> [B, N, H, W]

    compute_dtype=jnp.bfloat16 halves HBM/VMEM traffic on v6e/v7x (f32
    accumulation is kept); default f32 for bit-tight parity with the reference.
    """
    assert temperature > 0, "temperature must be > 0 (folded into linear weights)"
    B, C, H, W = image_features.shape
    N = exemplar_features.shape[1]
    HW = H * W
    eps = 1e-5

    # Fold 1x1 conv + eval-mode BN into a single affine: y = W_img x + b_img
    w_conv = params["conv_w"].reshape(C, C).astype(jnp.float32)          # [out, in]
    scale = params["bn_gamma"] / jnp.sqrt(params["bn_var"] + eps)
    wi = scale[:, None] * w_conv                                          # [out, in]
    bi = scale * (params["conv_b"] - params["bn_mean"]) + params["bn_beta"]

    # Fold 1/temperature into the exemplar Linear (ReLU commutes with s > 0).
    inv_temp = 1.0 / temperature
    we_t = params["lin_w"].T * inv_temp                                   # [in, out]
    be = params["lin_b"] * inv_temp

    wi = wi.astype(compute_dtype)
    bi = bi.reshape(C, 1).astype(jnp.float32)     # biases stay f32 (VPU adds in f32)
    we_t = we_t.astype(compute_dtype)
    be = be.reshape(1, C).astype(jnp.float32)

    # Native NCHW: only a free reshape, NO transpose / extra HBM pass.
    img = image_features.reshape(B, C, HW).astype(compute_dtype)
    ex = exemplar_features.astype(compute_dtype)

    itemsize = np.dtype(compute_dtype).itemsize
    Bt = _largest_divisor_leq(B, 8)               # batches per grid step
    TILE_HW = _pick_hw_tile(HW, C, N, Bt, itemsize)
    grid = (B // Bt, HW // TILE_HW)

    # Explicit VMEM budget (double-buffered blocks + weights), capped below the
    # v7x 64 MiB physical VMEM.
    block_bytes = (2 * Bt * C * TILE_HW * itemsize
                   + 2 * Bt * N * C * itemsize
                   + 2 * Bt * N * TILE_HW * 4
                   + 2 * (2 * C * C * itemsize + 2 * C * 4))
    vmem_limit = int(min(max(2 * block_bytes + (4 << 20), 16 << 20), 48 << 20))

    out = pl.pallas_call(
        _exemplar_match_kernel,
        out_shape=jax.ShapeDtypeStruct((B, N, HW), jnp.float32),
        grid_spec=pltpu.PrefetchScalarGridSpec(
            num_scalar_prefetch=0,
            grid=grid,
            in_specs=[
                pl.BlockSpec((Bt, C, TILE_HW), lambda b, h: (b, 0, h)),  # image [B,C,HW]
                pl.BlockSpec((Bt, N, C), lambda b, h: (b, 0, 0)),        # exemplars
                pl.BlockSpec((C, C), lambda b, h: (0, 0)),               # folded conv W
                pl.BlockSpec((C, 1), lambda b, h: (0, 0)),               # folded conv bias
                pl.BlockSpec((C, C), lambda b, h: (0, 0)),               # linear W^T / T
                pl.BlockSpec((1, C), lambda b, h: (0, 0)),               # linear bias / T
            ],
            out_specs=pl.BlockSpec((Bt, N, TILE_HW), lambda b, h: (b, 0, h)),
        ),
        compiler_params=pltpu.CompilerParams(
            dimension_semantics=("parallel", "parallel"),
            vmem_limit_bytes=vmem_limit),
    )(img, ex, wi, bi, we_t, be)

    return out.reshape(B, N, H, W)


def _reference(image_features, exemplar_features, params, temperature):
    """Pure-JAX reference matching the PyTorch forward (eval-mode BN)."""
    B, C, H, W = image_features.shape
    eps = 1e-5
    w = params["conv_w"].reshape(C, C)
    x = jnp.einsum("oc,bchw->bohw", w, image_features) \
        + params["conv_b"][None, :, None, None]
    x = (x - params["bn_mean"][None, :, None, None]) \
        / jnp.sqrt(params["bn_var"][None, :, None, None] + eps)
    x = x * params["bn_gamma"][None, :, None, None] \
        + params["bn_beta"][None, :, None, None]
    x = jnp.maximum(x, 0.0)
    e = jnp.maximum(exemplar_features @ params["lin_w"].T + params["lin_b"], 0.0)
    sim = jnp.einsum("bnc,bcp->bnp", e, x.reshape(B, C, H * W)) / temperature
    sim = jax.nn.softmax(sim, axis=1)
    return sim.reshape(B, -1, H, W)


if __name__ == "__main__":
    B, C, H, W, N = 2, 32, 16, 16, 8   # embed_dim=32 for the small test
    temperature = 0.1

    key = jax.random.PRNGKey(0)
    ks = jax.random.split(key, 10)
    image = jax.random.normal(ks[0], (B, C, H, W), jnp.float32)
    exemplar = jax.random.normal(ks[1], (B, N, C), jnp.float32)

    params = {
        "conv_w": 0.1 * jax.random.normal(ks[2], (C, C, 1, 1), jnp.float32),
        "conv_b": 0.1 * jax.random.normal(ks[3], (C,), jnp.float32),
        "bn_gamma": 1.0 + 0.1 * jax.random.normal(ks[4], (C,), jnp.float32),
        "bn_beta": 0.1 * jax.random.normal(ks[5], (C,), jnp.float32),
        "bn_mean": 0.1 * jax.random.normal(ks[6], (C,), jnp.float32),
        "bn_var": 1.0 + 0.1 * jnp.abs(jax.random.normal(ks[7], (C,), jnp.float32)),
        "lin_w": 0.1 * jax.random.normal(ks[8], (C, C), jnp.float32),
        "lin_b": 0.1 * jax.random.normal(ks[9], (C,), jnp.float32),
    }

    out = exemplar_image_matching(image, exemplar, params, temperature)
    out = jax.block_until_ready(out)

    ref = _reference(image, exemplar, params, temperature)
    assert out.shape == (B, N, H, W)
    np.testing.assert_allclose(np.asarray(out), np.asarray(ref),
                               rtol=5e-4, atol=1e-5)
    print("KERNEL_OK")
</pallas_src>

<mosaic_0001>
module attributes {stable_mosaic.version = 11 : i64} {
  func.func @_exemplar_match_kernel(%arg0: i32, %arg1: i32, %arg2: memref<2x32x256xf32, #tpu.memory_space<vmem>>, %arg3: memref<2x8x32xf32, #tpu.memory_space<vmem>>, %arg4: memref<32x32xf32, #tpu.memory_space<vmem>>, %arg5: memref<32x1xf32, #tpu.memory_space<vmem>>, %arg6: memref<32x32xf32, #tpu.memory_space<vmem>>, %arg7: memref<1x32xf32, #tpu.memory_space<vmem>>, %arg8: memref<2x8x256xf32, #tpu.memory_space<vmem>>) attributes {dimension_semantics = [#tpu.dimension_semantics<parallel>, #tpu.dimension_semantics<parallel>], iteration_bounds = array<i64: 1, 1>, scalar_prefetch = 0 : i64, scratch_operands = 0 : i64, tpu.core_type = #tpu.core_type<tc>, window_params = [{transform_indices = @transform_0, window_bounds = array<i64: 2, 32, 256>}, {transform_indices = @transform_1, window_bounds = array<i64: 2, 8, 32>}, {pipeline_mode = #tpu.pipeline_mode<synchronous>, transform_indices = @transform_2, window_bounds = array<i64: 32, 32>}, {pipeline_mode = #tpu.pipeline_mode<synchronous>, transform_indices = @transform_3, window_bounds = array<i64: 32, 1>}, {pipeline_mode = #tpu.pipeline_mode<synchronous>, transform_indices = @transform_4, window_bounds = array<i64: 32, 32>}, {pipeline_mode = #tpu.pipeline_mode<synchronous>, transform_indices = @transform_5, window_bounds = array<i64: 1, 32>}, {transform_indices = @transform_6, window_bounds = array<i64: 2, 8, 256>}]} {
    %c0 = arith.constant 0 : index
    %c0_0 = arith.constant 0 : index
    %0 = vector.load %arg4[%c0, %c0_0] : memref<32x32xf32, #tpu.memory_space<vmem>>, vector<32x32xf32>
    %c0_1 = arith.constant 0 : index
    %c0_2 = arith.constant 0 : index
    %1 = vector.load %arg5[%c0_1, %c0_2] : memref<32x1xf32, #tpu.memory_space<vmem>>, vector<32x1xf32>
    %c0_3 = arith.constant 0 : index
    %c0_4 = arith.constant 0 : index
    %c0_5 = arith.constant 0 : index
    %2 = vector.load %arg3[%c0_3, %c0_4, %c0_5] : memref<2x8x32xf32, #tpu.memory_space<vmem>>, vector<2x8x32xf32>
    %3 = vector.shape_cast %2 : vector<2x8x32xf32> to vector<16x32xf32>
    %c0_6 = arith.constant 0 : index
    %c0_7 = arith.constant 0 : index
    %4 = vector.load %arg6[%c0_6, %c0_7] : memref<32x32xf32, #tpu.memory_space<vmem>>, vector<32x32xf32>
    %cst = arith.constant dense<0.000000e+00> : vector<16x32xf32>
    %5 = tpu.matmul %3, %4, %cst {dimension_numbers = #tpu.dot_dimension_numbers<[1], [0], [0], [1], [0, 0, 1, 1], [], []>} : vector<16x32xf32>, vector<32x32xf32>, vector<16x32xf32> -> vector<16x32xf32>
    %c0_8 = arith.constant 0 : index
    %c0_9 = arith.constant 0 : index
    %6 = vector.load %arg7[%c0_8, %c0_9] : memref<1x32xf32, #tpu.memory_space<vmem>>, vector<1x32xf32>
    %7 = vector.broadcast %6 : vector<1x32xf32> to vector<16x32xf32>
    %8 = arith.addf %5, %7 : vector<16x32xf32>
    %cst_10 = arith.constant 0.000000e+00 : f32
    %9 = vector.broadcast %cst_10 : f32 to vector<16x32xf32>
    %10 = arith.maximumf %8, %9 : vector<16x32xf32>
    %11 = vector.shape_cast %10 : vector<16x32xf32> to vector<2x8x32xf32>
    %c0_11 = arith.constant 0 : index
    %c0_12 = arith.constant 0 : index
    %c0_13 = arith.constant 0 : index
    %12 = vector.load %arg2[%c0_11, %c0_12, %c0_13] : memref<2x32x256xf32, #tpu.memory_space<vmem>>, vector<1x32x256xf32>
    %13 = vector.shape_cast %12 : vector<1x32x256xf32> to vector<32x256xf32>
    %cst_14 = arith.constant dense<0.000000e+00> : vector<32x256xf32>
    %14 = tpu.matmul %0, %13, %cst_14 {dimension_numbers = #tpu.dot_dimension_numbers<[1], [0], [0], [1], [0, 0, 1, 1], [], []>} : vector<32x32xf32>, vector<32x256xf32>, vector<32x256xf32> -> vector<32x256xf32>
    %15 = vector.broadcast %1 : vector<32x1xf32> to vector<32x256xf32>
    %16 = arith.addf %14, %15 : vector<32x256xf32>
    %cst_15 = arith.constant 0.000000e+00 : f32
    %17 = vector.broadcast %cst_15 : f32 to vector<32x256xf32>
    %18 = arith.maximumf %16, %17 : vector<32x256xf32>
    %19 = vector.extract_strided_slice %11 {offsets = [0, 0, 0], sizes = [1, 8, 32], strides = [1, 1, 1]} : vector<2x8x32xf32> to vector<1x8x32xf32>
    %20 = vector.shape_cast %19 : vector<1x8x32xf32> to vector<8x32xf32>
    %cst_16 = arith.constant dense<0.000000e+00> : vector<8x256xf32>
    %21 = tpu.matmul %20, %18, %cst_16 {dimension_numbers = #tpu.dot_dimension_numbers<[1], [0], [0], [1], [0, 0, 1, 1], [], []>} : vector<8x32xf32>, vector<32x256xf32>, vector<8x256xf32> -> vector<8x256xf32>
    %cst_17 = arith.constant dense<0xFF800000> : vector<256xf32>
    %22 = vector.multi_reduction <maximumf>, %21, %cst_17 [0] : vector<8x256xf32> to vector<256xf32>
    %23 = vector.shape_cast %22 : vector<256xf32> to vector<1x256xf32>
    %24 = vector.broadcast %23 : vector<1x256xf32> to vector<8x256xf32>
    %25 = arith.subf %21, %24 : vector<8x256xf32>
    %26 = math.exp %25 : vector<8x256xf32>
    %cst_18 = arith.constant dense<0.000000e+00> : vector<256xf32>
    %27 = vector.multi_reduction <add>, %26, %cst_18 [0] : vector<8x256xf32> to vector<256xf32>
    %28 = vector.shape_cast %27 : vector<256xf32> to vector<1x256xf32>
    %29 = tpu.reciprocal %28 : vector<1x256xf32> -> vector<1x256xf32>
    %30 = vector.broadcast %29 : vector<1x256xf32> to vector<8x256xf32>
    %31 = arith.mulf %26, %30 : vector<8x256xf32>
    %c0_19 = arith.constant 0 : index
    %c0_20 = arith.constant 0 : index
    %c0_21 = arith.constant 0 : index
    %32 = vector.load %arg8[%c0_19, %c0_20, %c0_21] : memref<2x8x256xf32, #tpu.memory_space<vmem>>, vector<1x8x256xf32>
    %33 = vector.shape_cast %32 : vector<1x8x256xf32> to vector<8x256xf32>
    %34 = vector.shape_cast %31 : vector<8x256xf32> to vector<1x8x256xf32>
    tpu.vector_store %arg8[%c0_19, %c0_20, %c0_21], %34 {strides = array<i32>} : memref<2x8x256xf32, #tpu.memory_space<vmem>>, vector<1x8x256xf32>,
    %c1 = arith.constant 1 : index
    %c0_22 = arith.constant 0 : index
    %c0_23 = arith.constant 0 : index
    %35 = vector.load %arg2[%c1, %c0_22, %c0_23] : memref<2x32x256xf32, #tpu.memory_space<vmem>>, vector<1x32x256xf32>
    %36 = vector.shape_cast %35 : vector<1x32x256xf32> to vector<32x256xf32>
    %cst_24 = arith.constant dense<0.000000e+00> : vector<32x256xf32>
    %37 = tpu.matmul %0, %36, %cst_24 {dimension_numbers = #tpu.dot_dimension_numbers<[1], [0], [0], [1], [0, 0, 1, 1], [], []>} : vector<32x32xf32>, vector<32x256xf32>, vector<32x256xf32> -> vector<32x256xf32>
    %38 = vector.broadcast %1 : vector<32x1xf32> to vector<32x256xf32>
    %39 = arith.addf %37, %38 : vector<32x256xf32>
    %cst_25 = arith.constant 0.000000e+00 : f32
    %40 = vector.broadcast %cst_25 : f32 to vector<32x256xf32>
    %41 = arith.maximumf %39, %40 : vector<32x256xf32>
    %42 = vector.extract_strided_slice %11 {offsets = [1, 0, 0], sizes = [1, 8, 32], strides = [1, 1, 1]} : vector<2x8x32xf32> to vector<1x8x32xf32>
    %43 = vector.shape_cast %42 : vector<1x8x32xf32> to vector<8x32xf32>
    %cst_26 = arith.constant dense<0.000000e+00> : vector<8x256xf32>
    %44 = tpu.matmul %43, %41, %cst_26 {dimension_numbers = #tpu.dot_dimension_numbers<[1], [0], [0], [1], [0, 0, 1, 1], [], []>} : vector<8x32xf32>, vector<32x256xf32>, vector<8x256xf32> -> vector<8x256xf32>
    %cst_27 = arith.constant dense<0xFF800000> : vector<256xf32>
    %45 = vector.multi_reduction <maximumf>, %44, %cst_27 [0] : vector<8x256xf32> to vector<256xf32>
    %46 = vector.shape_cast %45 : vector<256xf32> to vector<1x256xf32>
    %47 = vector.broadcast %46 : vector<1x256xf32> to vector<8x256xf32>
    %48 = arith.subf %44, %47 : vector<8x256xf32>
    %49 = math.exp %48 : vector<8x256xf32>
    %cst_28 = arith.constant dense<0.000000e+00> : vector<256xf32>
    %50 = vector.multi_reduction <add>, %49, %cst_28 [0] : vector<8x256xf32> to vector<256xf32>
    %51 = vector.shape_cast %50 : vector<256xf32> to vector<1x256xf32>
    %52 = tpu.reciprocal %51 : vector<1x256xf32> -> vector<1x256xf32>
    %53 = vector.broadcast %52 : vector<1x256xf32> to vector<8x256xf32>
    %54 = arith.mulf %49, %53 : vector<8x256xf32>
    %c1_29 = arith.constant 1 : index
    %c0_30 = arith.constant 0 : index
    %c0_31 = arith.constant 0 : index
    %55 = vector.load %arg8[%c1_29, %c0_30, %c0_31] : memref<2x8x256xf32, #tpu.memory_space<vmem>>, vector<1x8x256xf32>
    %56 = vector.shape_cast %55 : vector<1x8x256xf32> to vector<8x256xf32>
    %57 = vector.shape_cast %54 : vector<8x256xf32> to vector<1x8x256xf32>
    tpu.vector_store %arg8[%c1_29, %c0_30, %c0_31], %57 {strides = array<i32>} : memref<2x8x256xf32, #tpu.memory_space<vmem>>, vector<1x8x256xf32>,
    return
  }
  func.func @transform_0(%arg0: i32, %arg1: i32) -> (i32, i32, i32) {
    %c0_i32 = arith.constant 0 : i32
    %c0_i32_0 = arith.constant 0 : i32
    return %arg0, %c0_i32, %arg1 : i32, i32, i32
  }
  func.func @transform_1(%arg0: i32, %arg1: i32) -> (i32, i32, i32) {
    %c0_i32 = arith.constant 0 : i32
    %c0_i32_0 = arith.constant 0 : i32
    %c0_i32_1 = arith.constant 0 : i32
    return %arg0, %c0_i32, %c0_i32_0 : i32, i32, i32
  }
  func.func @transform_2(%arg0: i32, %arg1: i32) -> (i32, i32) {
    %c0_i32 = arith.constant 0 : i32
    %c0_i32_0 = arith.constant 0 : i32
    %c0_i32_1 = arith.constant 0 : i32
    return %c0_i32, %c0_i32_0 : i32, i32
  }
  func.func @transform_3(%arg0: i32, %arg1: i32) -> (i32, i32) {
    %c0_i32 = arith.constant 0 : i32
    %c0_i32_0 = arith.constant 0 : i32
    %c0_i32_1 = arith.constant 0 : i32
    return %c0_i32, %c0_i32_0 : i32, i32
  }
  func.func @transform_4(%arg0: i32, %arg1: i32) -> (i32, i32) {
    %c0_i32 = arith.constant 0 : i32
    %c0_i32_0 = arith.constant 0 : i32
    %c0_i32_1 = arith.constant 0 : i32
    return %c0_i32, %c0_i32_0 : i32, i32
  }
  func.func @transform_5(%arg0: i32, %arg1: i32) -> (i32, i32) {
    %c0_i32 = arith.constant 0 : i32
    %c0_i32_0 = arith.constant 0 : i32
    %c0_i32_1 = arith.constant 0 : i32
    return %c0_i32, %c0_i32_0 : i32, i32
  }
  func.func @transform_6(%arg0: i32, %arg1: i32) -> (i32, i32, i32) {
    %c0_i32 = arith.constant 0 : i32
    %c0_i32_0 = arith.constant 0 : i32
    return %arg0, %c0_i32, %arg1 : i32, i32, i32
  }
}

</mosaic_0001>

<bundles_post_ra>
// kernel: tpu_custom_call.1
= control target key start
LH: loop header
LB: loop body
LE: loop exit
PB: predicated region body
PF: predicated region fallthrough
CT: control target
= control target key end

     0   :  { %11 = vsyncpa [#allocation3], 0  ;;  %s951_s0 = inlined_call_operand.hbm [shape: f32[2,32,256], index: 0, kind: input, shape index: {}]   ;;  %s952_s1 = inlined_call_operand.hbm [shape: f32[2,8,32], index: 1, kind: input, shape index: {}]   ;;  %s953_s2 = inlined_call_operand.vmem [shape: f32[32,32], index: 2, kind: input, shape index: {}]   ;;  %s954_s3 = inlined_call_operand.vmem [shape: f32[32,1], index: 3, kind: input, shape index: {}]   ;;  %s955_s4 = inlined_call_operand.hbm [shape: f32[32,32], index: 4, kind: input, shape index: {}]   ;;  %s956_s5 = inlined_call_operand.vmem [shape: f32[1,32], index: 5, kind: input, shape index: {}]   ;;  %s957_s6 = inlined_call_operand.hbm [shape: f32[2,8,256], index: 6, kind: output, shape index: {}]  }
   0x1   :  { %12 = vsyncpa [#allocation6], 0 }
   0x2   :  { %13 = vsyncpa [#allocation4], 0  ;;  %s796_s21 = smov [#allocation5]  }
   0x3   :  { %s31_s22 = sshll.u32 %s796_s21, 4  ;;  %s32_s22 = int_to_ptr.vmem [resolvable:$true] %s31_s22 }
   0x4   :  { %s718_s23 = scalar_lea.vmem %s32_s22, 256  ;;  %p723_p1 = scmp.lt.s32.totalorder %s32_s22, %s32_s22 }
   0x5   :  { %p719_p0 = scmp.ne.s32.totalorder %s32_s22, %s718_s23  ;;  %p724_p2 = scmp.lt.s32.totalorder %s718_s23, %s718_s23 }
   0x7   :  { %p725_p3 = por %p724_p2, %p723_p1 }
   0x9   :  { %p726_p4 = pnand %p725_p3, %p719_p0 }
   0xb   :  { %729 = shalt.err (!%p726_p4)
}
   0xc   :  { %s797_s24 = smov 128   ;;  %s798_s25 = smov 8  }
   0xd   :  { %37 = dma.hbm_to_vmem [thread:$0]  %s952_s1, 256, %s32_s22, [#allocation6], %s797_s24, %s797_s24, %s798_s25  }
   0xe   :  { %s799_s28 = smov [#allocation2]  }
   0xf   :  { %s19_s29 = sshll.u32 %s799_s28, 4  ;;  %s20_s29 = int_to_ptr.vmem [resolvable:$true] %s19_s29 }
  0x10   :  { %s738_s30 = scalar_lea.vmem %s20_s29, 2048  ;;  %p743_p6 = scmp.lt.s32.totalorder %s20_s29, %s20_s29 }
  0x11   :  { %p739_p5 = scmp.ne.s32.totalorder %s20_s29, %s738_s30  ;;  %p744_p7 = scmp.lt.s32.totalorder %s738_s30, %s738_s30 }
  0x13   :  { %p745_p8 = por %p744_p7, %p743_p6 }
  0x15   :  { %p746_p9 = pnand %p745_p8, %p739_p5 }
  0x17   :  { %749 = shalt.err (!%p746_p9)
}
  0x18   :  { %s800_s7 = smov 256   ;;  %s801_s8 = smov 16  }
  0x19   :  { %25 = dma.hbm_to_vmem [thread:$0]  %s951_s0, 2048, %s20_s29, [#allocation3], %s800_s7, %s800_s7, %s801_s8  }
  0x1a   :  { %s802_s1 = smov [#allocation7]  }
  0x1b   :  { %s47_s11 = sshll.u32 %s802_s1, 4  ;;  %s48_s11 = int_to_ptr.vmem [resolvable:$true] %s47_s11 }
  0x1c   :  { %s758_s12 = scalar_lea.vmem %s48_s11, 512  ;;  %p763_p11 = scmp.lt.s32.totalorder %s48_s11, %s48_s11 }
  0x1d   :  { %p759_p10 = scmp.ne.s32.totalorder %s48_s11, %s758_s12  ;;  %p764_p12 = scmp.lt.s32.totalorder %s758_s12, %s758_s12 }
  0x1f   :  { %p765_p13 = por %p764_p12, %p763_p11 }
  0x21   :  { %p766_p0 = pnand %p765_p13, %p759_p10 }
  0x23   :  { %769 = shalt.err (!%p766_p0)
}
  0x24   :  { %53 = dma.hbm_to_vmem [thread:$0]  %s955_s4, 512, %s48_s11, [#allocation6], %s797_s24, %s797_s24, %s798_s25  }
  0x25   :  { %790 = dma.done.wait [#allocation3], 2048  }
  0x26   :  { %791 = vsyncadd [#allocation3], 4294965248 }
  0x27   :  { %792 = dma.done.wait [#allocation6], 768  }
  0x28   :  { %793 = vsyncadd [#allocation6], 4294966528  ;;  %v803_v0 = vmov 0   ;;  %v804_v1 = vmov 0.0   ;;  %vm86_vm0 = vcmask 261120   ;;  %v78_v2 = vld [vmem:[#allocation7 + $0x18] sm:$0xff] }
  0x29   :  { %693 = vset.pattern.permute.xlu1 %v803_v0  ;;  %692 = vset.pattern.permute.xlu0 %v803_v0  ;;  %v77_v3 = vld [vmem:[#allocation7 + $0x10] sm:$0xff]  ;;  %v76_v5 = vld [vmem:[#allocation7 + $0x8] sm:$0xff]  ;;  %v75_v6 = vld [vmem:[#allocation7] sm:$0xff] }
  0x2a   :  { %374 = vmatprep.mubr.f32.mxu0 %v804_v1  ;;  %671 = vmatprep.subr.mxu1 %v78_v2  ;;  %v73_v4 = vld [vmem:[#allocation5] sm:$0xff]  ;;  %v74_v7 = vld [vmem:[#allocation5 + $0x8] sm:$0xff]  ;;  %v177_v8 = vld [vmem:[#allocation2 + $0x38] sm:$0xff] }
  0x2b   :  { %672 = vmatpush3.msra.mxu1 %v78_v2  ;;  %679 = vmatprep.mubr.msk.f32.mxu1 %vm86_vm0, %v73_v4  ;;  %v70_v9 = vld [vmem:[%s954_s3 + $0x8] sm:$0xff]  ;;  %v72_v10 = vld [vmem:[%s954_s3 + $0x18] sm:$0xff]  ;;  %v176_v11 = vld [vmem:[#allocation2 + $0x30] sm:$0xff] }
  0x2c   :  { %673 = vmatprep.subr.mxu1 %v77_v3  ;;  %185 = vperm.xlu1 %693, %v70_v9   ;;  %v175_v12 = vld [vmem:[#allocation2 + $0x28] sm:$0xff]  ;;  %v69_v13 = vld [vmem:[%s954_s3] sm:$0xff]  ;;  %v71_v15 = vld [vmem:[%s954_s3 + $0x10] sm:$0xff] }
  0x2d   :  { %674 = vmatpush3.msra.mxu1 %v77_v3  ;;  %195 = vperm.xlu0 %692, %v72_v10   ;;  %v174_v14 = vld [vmem:[#allocation2 + $0x20] sm:$0xff]  ;;  %v173_v16 = vld [vmem:[#allocation2 + $0x18] sm:$0xff]  ;;  %v172_v17 = vld [vmem:[#allocation2 + $0x10] sm:$0xff] }
  0x2e   :  { %675 = vmatprep.subr.mxu1 %v76_v5  ;;  %v171_v18 = vld [vmem:[#allocation2 + $0x8] sm:$0xff]  ;;  %v170_v19 = vld [vmem:[#allocation2] sm:$0xff]  ;;  %v888_v22 = vld [vmem:[%s953_s2 + $0x10] sm:$0xff] }
  0x2f   :  { %676 = vmatpush3.msra.mxu1 %v76_v5  ;;  %v872_v20 = vld [vmem:[%s953_s2] sm:$0xff]  ;;  %v880_v21 = vld [vmem:[%s953_s2 + $0x8] sm:$0xff]  ;;  %v896_v23 = vld [vmem:[%s953_s2 + $0x18] sm:$0xff]  ;;  %s805_s2 = smov [#allocation8]  }
  0x30   :  { %677 = vmatprep.subr.mxu1 %v75_v6  ;;  %180 = vperm.xlu1 %693, %v69_v13   ;;  %v652_v24 = vld [vmem:[%s956_s5] ss:$0 sm:$0xff]  ;;  %v425_v57 = vld [vmem:[#allocation2 + $0x78] sm:$0xff]  ;;  %v424_v59 = vld [vmem:[#allocation2 + $0x70] sm:$0xff]  ;;  %s639_s5 = sshll.u32 %s805_s2, 4  ;;  %s640_s5 = int_to_ptr.vmem [resolvable:$true] %s639_s5 }
  0x31   :  { %678 = vmatpush3.msra.mxu1 %v75_v6  ;;  %190 = vperm.xlu0 %692, %v71_v15   ;;  %v423_v60 = vld [vmem:[#allocation2 + $0x68] sm:$0xff]  ;;  %v422_v61 = vld [vmem:[#allocation2 + $0x60] sm:$0xff]  ;;  %v421_v62 = vld [vmem:[#allocation2 + $0x58] sm:$0xff]  ;;  %s770_s30 = scalar_lea.vmem %s640_s5, 512  ;;  %p775_p2 = scmp.lt.s32.totalorder %s640_s5, %s640_s5 }
  0x32   :  { %680 = vmatmul.mubr.msk.f32.vlgmr.msra.gmra.mxu1 %vm86_vm0, %v74_v7  ;;  %234 = vmatprep.subr.mxu1 %v177_v8  ;;  %v420_v63 = vld [vmem:[#allocation2 + $0x50] sm:$0xff]  ;;  %v419_v0 = vld [vmem:[#allocation2 + $0x48] sm:$0xff]  ;;  %v418_v2 = vld [vmem:[#allocation2 + $0x40] sm:$0xff]  ;;  %p771_p1 = scmp.ne.s32.totalorder %s640_s5, %s770_s30  ;;  %p776_p3 = scmp.lt.s32.totalorder %s770_s30, %s770_s30 }
  0x33   :  { %235 = vmatpush1.msra.mxu1 %v176_v11  ;;  %274 = vmatprep.mubr.f32.mxu1 %v804_v1 }
  0x34   :  { %236 = vmatprep.subr.mxu1 %v175_v12  ;;  %p777_p4 = por %p776_p3, %p775_p2 }
  0x35   :  { %237 = vmatpush1.msra.mxu1 %v174_v14 }
  0x36   :  { %238 = vmatprep.subr.mxu1 %v173_v16  ;;  %p778_p5 = pnand %p777_p4, %p771_p1 }
  0x37   :  { %239 = vmatpush1.msra.mxu1 %v172_v17 }
  0x38   :  { %240 = vmatprep.subr.mxu1 %v171_v18 }
  0x39   :  { %241 = vmatpush1.msra.mxu1 %v170_v19 }
  0x3a   :  { %655 = vmatmul.mubr.msk.f32.vlgmr.msra.gmra.mxu1 %vm86_vm0, %v872_v20 }
  0x3b   :  { %280 = vmatprep.mubr.f32.mxu1 %v804_v1 }
  0x3e   :  { %656 = vmatmul.mubr.msk.f32.gmra.mxu1 %vm86_vm0, %v880_v21 }
  0x3f   :  { %286 = vmatprep.mubr.f32.mxu1 %v804_v1 }
  0x42   :  { %657 = vmatmul.mubr.msk.f32.gmra.mxu1 %vm86_vm0, %v888_v22 }
  0x43   :  { %292 = vmatprep.mubr.f32.mxu1 %v804_v1 }
  0x46   :  { %658 = vmatmul.mubr.msk.f32.gmra.mxu1 %vm86_vm0, %v896_v23 }
  0x47   :  { %590 = vmatprep.mubr.f32.mxu1 %v804_v1 }
  0xa7   :  { %v908_v35 = vpop.permute.xlu1 %185 }
  0xa8   :  { %v906_v32 = vpop.permute.xlu0 %195 }
  0xab   :  { %v916_v43 = vpop.permute.xlu1 %180 }
  0xac   :  { %v910_v37 = vpop.permute.xlu0 %190 }
  0xf2   :  { %v681_v25 = vpop.f32.mrf.mxu1 }
  0xf3   :  { %v904_v26 = vadd.f32 %v681_v25, %v652_v24 }
  0xf4   :  { %v159_v27 = vpop.f32.mrf.mxu1 }
  0xf5   :  { %v160_v52 = vadd.f32 %v652_v24, %v159_v27 }
  0xf7   :  { %v168_v58 = vmax.f32 %v160_v52, 0.0 }
  0xfa   :  { %v276_v28 = vpop.f32.mrf.mxu1 }
  0xfb   :  { %v277_v50 = vadd.f32 %v276_v28, %v916_v43 }
  0xfc   :  { %v278_v29 = vpop.f32.mrf.mxu1 }
  0xfd   :  { %v279_v48 = vadd.f32 %v278_v29, %v916_v43  ;;  %v299_v56 = vmax.f32 %v277_v50, 0.0 }
  0xfe   :  { %v282_v30 = vpop.f32.mrf.mxu1 }
  0xff   :  { %v283_v46 = vadd.f32 %v282_v30, %v908_v35  ;;  %v300_v55 = vmax.f32 %v279_v48, 0.0 }
 0x100   :  { %v284_v31 = vpop.f32.mrf.mxu1 }
 0x101   :  { %v285_v44 = vadd.f32 %v284_v31, %v908_v35  ;;  %v301_v54 = vmax.f32 %v283_v46, 0.0 }
 0x102   :  { %v288_v33 = vpop.f32.mrf.mxu1 }
 0x103   :  { %v289_v42 = vadd.f32 %v288_v33, %v910_v37  ;;  %v302_v53 = vmax.f32 %v285_v44, 0.0 }
 0x104   :  { %v290_v34 = vpop.f32.mrf.mxu1 }
 0x105   :  { %v291_v40 = vadd.f32 %v290_v34, %v910_v37  ;;  %v303_v51 = vmax.f32 %v289_v42, 0.0 }
 0x106   :  { %v294_v36 = vpop.f32.mrf.mxu1 }
 0x107   :  { %v295_v38 = vadd.f32 %v294_v36, %v906_v32  ;;  %v304_v49 = vmax.f32 %v291_v40, 0.0 }
 0x108   :  { %v296_v39 = vpop.f32.mrf.mxu1 }
 0x109   :  { %v297_v41 = vadd.f32 %v296_v39, %v906_v32  ;;  %v305_v47 = vmax.f32 %v295_v38, 0.0 }
 0x10b   :  { %v306_v45 = vmax.f32 %v297_v41, 0.0 }
 0x10d   :  { %334 = vmatprep.subr.mxu0 %v306_v45 }
 0x10e   :  { %335 = vmatpush1.msra.mxu0 %v305_v47 }
 0x10f   :  { %336 = vmatprep.subr.mxu0 %v304_v49 }
 0x110   :  { %337 = vmatpush1.msra.mxu0 %v303_v51 }
 0x111   :  { %338 = vmatprep.subr.mxu0 %v302_v53 }
 0x112   :  { %339 = vmatpush1.msra.mxu0 %v301_v54 }
 0x113   :  { %340 = vmatprep.subr.mxu0 %v300_v55 }
 0x114   :  { %341 = vmatpush1.msra.mxu0 %v299_v56 }
 0x115   :  { %659 = vmatmul.mubr.msk.f32.vlgmr.msra.gmra.mxu0 %vm86_vm0, %v168_v58  ;;  %450 = vmatprep.subr.mxu0 %v425_v57 }
 0x116   :  { %451 = vmatpush1.msra.mxu0 %v424_v59  ;;  %490 = vmatprep.mubr.f32.mxu0 %v804_v1 }
 0x117   :  { %452 = vmatprep.subr.mxu0 %v423_v60 }
 0x118   :  { %453 = vmatpush1.msra.mxu0 %v422_v61 }
 0x119   :  { %454 = vmatprep.subr.mxu0 %v421_v62 }
 0x11a   :  { %455 = vmatpush1.msra.mxu0 %v420_v63 }
 0x11b   :  { %456 = vmatprep.subr.mxu0 %v419_v0 }
 0x11c   :  { %457 = vmatpush1.msra.mxu0 %v418_v2 }
 0x11d   :  { %660 = vmatmul.mubr.msk.f32.vlgmr.msra.gmra.mxu0 %vm86_vm0, %v872_v20 }
 0x11e   :  { %496 = vmatprep.mubr.f32.mxu0 %v804_v1 }
 0x121   :  { %661 = vmatmul.mubr.msk.f32.gmra.mxu0 %vm86_vm0, %v880_v21 }
 0x122   :  { %502 = vmatprep.mubr.f32.mxu0 %v804_v1 }
 0x125   :  { %662 = vmatmul.mubr.msk.f32.gmra.mxu0 %vm86_vm0, %v888_v22 }
 0x126   :  { %508 = vmatprep.mubr.f32.mxu0 %v804_v1 }
 0x129   :  { %663 = vmatmul.mubr.msk.f32.gmra.mxu0 %vm86_vm0, %v896_v23 }
 0x1d5   :  { %v376_v3 = vpop.f32.mrf.mxu0 }
 0x1d6   :  { %v381_v4 = vrot.slane %v376_v3, 4 }
 0x1d7   :  { %v378_v5 = vpop.f32.mrf.mxu0 }
 0x1d8   :  { %v382_v6 = vmax.f32 %v376_v3, %v381_v4  ;;  %v387_v7 = vrot.slane %v378_v5, 4 }
 0x1da   :  { %v383_v8 = vrot.slane %v382_v6, 2  ;;  %v388_v9 = vmax.f32 %v378_v5, %v387_v7 }
 0x1dc   :  { %v384_v10 = vmax.f32 %v382_v6, %v383_v8  ;;  %v389_v11 = vrot.slane %v388_v9, 2 }
 0x1dd   :  { %v492_v12 = vpop.f32.mrf.mxu0 }
 0x1de   :  { %v385_v13 = vrot.slane %v384_v10, 1  ;;  %v390_v14 = vmax.f32 %v388_v9, %v389_v11  ;;  %v493_v42 = vadd.f32 %v492_v12, %v916_v43 }
 0x1df   :  { %v494_v15 = vpop.f32.mrf.mxu0 }
 0x1e0   :  { %v386_v16 = vmax.f32 %v384_v10, %v385_v13  ;;  %v391_v17 = vrot.slane %v390_v14, 1  ;;  %v495_v40 = vadd.f32 %v494_v15, %v916_v43  ;;  %v515_v49 = vmax.f32 %v493_v42, 0.0 }
 0x1e1   :  { %v498_v18 = vpop.f32.mrf.mxu0 }
 0x1e2   :  { %v393_v1 = vsub.f32 %v376_v3, %v386_v16  ;;  %v392_v19 = vmax.f32 %v390_v14, %v391_v17  ;;  %v499_v38 = vadd.f32 %v498_v18, %v908_v35 }
 0x1e3   :  { %v500_v20 = vpop.f32.mrf.mxu0 }
 0x1e4   :  { %v395_v21 = vmul.f32 1.442695, %v393_v1  ;;  %v394_v22 = vsub.f32 %v378_v5, %v392_v19  ;;  %v501_v34 = vadd.f32 %v500_v20, %v908_v35  ;;  %v169_v35 = vmax.f32 %v904_v26, 0.0 }
 0x1e5   :  { %v504_v23 = vpop.f32.mrf.mxu0 }
 0x1e6   :  { %694 = vpow2.f32 %v395_v21  ;;  %v397_v24 = vmul.f32 1.442695, %v394_v22  ;;  %v505_v33 = vadd.f32 %v504_v23, %v910_v37  ;;  %v518_v45 = vmax.f32 %v501_v34, 0.0 }
 0x1e7   :  { %v506_v25 = vpop.f32.mrf.mxu0 }
 0x1e8   :  { %696 = vpow2.f32 %v397_v24  ;;  %v507_v30 = vadd.f32 %v506_v25, %v910_v37  ;;  %v519_v44 = vmax.f32 %v505_v33, 0.0  ;;  %v516_v37 = vmax.f32 %v495_v40, 0.0 }
 0x1e9   :  { %v510_v27 = vpop.f32.mrf.mxu0 }
 0x1ea   :  { %v511_v28 = vadd.f32 %v510_v27, %v906_v32  ;;  %v520_v41 = vmax.f32 %v507_v30, 0.0 }
 0x1eb   :  { %v512_v29 = vpop.f32.mrf.mxu0 }
 0x1ec   :  { %v513_v31 = vadd.f32 %v512_v29, %v906_v32  ;;  %v521_v39 = vmax.f32 %v511_v28, 0.0  ;;  %v517_v32 = vmax.f32 %v499_v38, 0.0 }
 0x1ee   :  { %v522_v36 = vmax.f32 %v513_v31, 0.0 }
 0x1f0   :  { %550 = vmatprep.subr.mxu1 %v522_v36 }
 0x1f1   :  { %551 = vmatpush1.msra.mxu1 %v521_v39 }
 0x1f2   :  { %552 = vmatprep.subr.mxu1 %v520_v41 }
 0x1f3   :  { %v695_v46 = vpop.eup %694  ;;  %553 = vmatpush1.msra.mxu1 %v519_v44 }
 0x1f4   :  { %554 = vmatprep.subr.mxu1 %v518_v45  ;;  %v399_v47 = vrot.slane %v695_v46, 4 }
 0x1f5   :  { %v697_v48 = vpop.eup %696  ;;  %555 = vmatpush1.msra.mxu1 %v517_v32 }
 0x1f6   :  { %556 = vmatprep.subr.mxu1 %v516_v37  ;;  %v400_v50 = vadd.f32 %v695_v46, %v399_v47  ;;  %v405_v51 = vrot.slane %v697_v48, 4 }
 0x1f7   :  { %557 = vmatpush1.msra.mxu1 %v515_v49 }
 0x1f8   :  { %664 = vmatmul.mubr.msk.f32.vlgmr.msra.gmra.mxu1 %vm86_vm0, %v169_v35  ;;  %v401_v43 = vrot.slane %v400_v50, 2  ;;  %v406_v52 = vadd.f32 %v697_v48, %v405_v51 }
 0x1fa   :  { %v402_v53 = vadd.f32 %v401_v43, %v400_v50  ;;  %v407_v54 = vrot.slane %v406_v52, 2 }
 0x1fc   :  { %v403_v55 = vrot.slane %v402_v53, 1  ;;  %v408_v56 = vadd.f32 %v407_v54, %v406_v52 }
 0x1fe   :  { %v404_v57 = vadd.f32 %v403_v55, %v402_v53  ;;  %v409_v58 = vrot.slane %v408_v56, 1 }
 0x200   :  { %v410_v59 = vadd.f32 %v409_v58, %v408_v56  ;;  %698 = vrcp.f32 %v404_v57 }
 0x202   :  { %700 = vrcp.f32 %v410_v59 }
 0x20d   :  { %v699_v60 = vpop.eup %698 }
 0x20e   :  { %v413_v61 = vmul.f32 %v699_v60, %v695_v46 }
 0x20f   :  { %v701_v26 = vpop.eup %700 }
 0x210   :  { %v414_v62 = vmul.f32 %v701_v26, %v697_v48  ;;  %415 = vst [vmem:[#allocation8] sm:$0xff] %v413_v61 }
 0x212   :  { %416 = vst [vmem:[#allocation8 + $0x8] sm:$0xff] %v414_v62 }
 0x2b8   :  { %v592_v63 = vpop.f32.mrf.mxu1 }
 0x2b9   :  { %v597_v0 = vrot.slane %v592_v63, 4 }
 0x2ba   :  { %v594_v2 = vpop.f32.mrf.mxu1 }
 0x2bb   :  { %v598_v3 = vmax.f32 %v592_v63, %v597_v0  ;;  %v603_v4 = vrot.slane %v594_v2, 4 }
 0x2bd   :  { %v599_v5 = vrot.slane %v598_v3, 2  ;;  %v604_v6 = vmax.f32 %v594_v2, %v603_v4 }
 0x2bf   :  { %v600_v7 = vmax.f32 %v598_v3, %v599_v5  ;;  %v605_v8 = vrot.slane %v604_v6, 2 }
 0x2c1   :  { %v601_v9 = vrot.slane %v600_v7, 1  ;;  %v606_v10 = vmax.f32 %v604_v6, %v605_v8 }
 0x2c3   :  { %v602_v11 = vmax.f32 %v600_v7, %v601_v9  ;;  %v607_v12 = vrot.slane %v606_v10, 1 }
 0x2c5   :  { %v609_v13 = vsub.f32 %v592_v63, %v602_v11  ;;  %v608_v14 = vmax.f32 %v606_v10, %v607_v12 }
 0x2c7   :  { %v611_v15 = vmul.f32 1.442695, %v609_v13  ;;  %v610_v16 = vsub.f32 %v594_v2, %v608_v14 }
 0x2c9   :  { %702 = vpow2.f32 %v611_v15  ;;  %v613_v17 = vmul.f32 1.442695, %v610_v16 }
 0x2cb   :  { %704 = vpow2.f32 %v613_v17 }
 0x2d6   :  { %v703_v18 = vpop.eup %702 }
 0x2d7   :  { %v615_v1 = vrot.slane %v703_v18, 4 }
 0x2d8   :  { %v705_v19 = vpop.eup %704 }
 0x2d9   :  { %v616_v20 = vadd.f32 %v703_v18, %v615_v1  ;;  %v621_v21 = vrot.slane %v705_v19, 4 }
 0x2db   :  { %v617_v22 = vrot.slane %v616_v20, 2  ;;  %v622_v23 = vadd.f32 %v705_v19, %v621_v21 }
 0x2dd   :  { %v618_v24 = vadd.f32 %v617_v22, %v616_v20  ;;  %v623_v25 = vrot.slane %v622_v23, 2 }
 0x2df   :  { %v619_v27 = vrot.slane %v618_v24, 1  ;;  %v624_v28 = vadd.f32 %v623_v25, %v622_v23 }
 0x2e1   :  { %v620_v29 = vadd.f32 %v619_v27, %v618_v24  ;;  %v625_v30 = vrot.slane %v624_v28, 1 }
 0x2e3   :  { %v626_v31 = vadd.f32 %v625_v30, %v624_v28  ;;  %706 = vrcp.f32 %v620_v29 }
 0x2e5   :  { %708 = vrcp.f32 %v626_v31 }
 0x2f0   :  { %v707_v33 = vpop.eup %706 }
 0x2f1   :  { %v629_v34 = vmul.f32 %v707_v33, %v703_v18 }
 0x2f2   :  { %v709_v36 = vpop.eup %708 }
 0x2f3   :  { %v630_v38 = vmul.f32 %v709_v36, %v705_v19  ;;  %632 = vst [vmem:[#allocation8 + $0x10] sm:$0xff] %v629_v34 }
 0x2f5   :  { %633 = vst [vmem:[#allocation8 + $0x18] sm:$0xff] %v630_v38 }
 0x2f6   :  { %781 = shalt.err (!%p778_p5)
}
 0x2f7   :  { %645 = dma.vmem_to_hbm [thread:$0]  %s640_s5, 512, %s957_s6, [#allocation4], %s800_s7, %s800_s7, %s801_s8  }
 0x2f8   :  { %794 = dma.done.wait [#allocation4], 512  }
 0x2f9   :  { %795 = vsyncadd [#allocation4], 4294966784 }
 0x2fa   :  { %649 = vsyncpa [#allocation3], 1 }
 0x2fb   :  { %650 = vsyncpa [#allocation6], 1 }
 0x2fc   :  { %651 = vsyncpa [#allocation4], 1 }

</bundles_post_ra>
